<compile_context>
chip_gen: v6e
topology: v6e:2x2x1
jax: 0.10.0
libtpu: 0.0.40
codegen_flags: <defaults>
</compile_context>

<pallas_src>
import numpy as np
import jax
import jax.numpy as jnp
from jax.experimental import pallas as pl
from jax.experimental.pallas import tpu as pltpu

NEG_SLOPE = 0.01  # nn.LeakyReLU default


def _leaky(x):
    return jnp.where(x > 0, x, NEG_SLOPE * x)


def _round_up(x, m):
    return ((x + m - 1) // m) * m


def _pad2(a, rows, cols, dtype=jnp.float32):
    out = jnp.zeros((rows, cols), dtype)
    return out.at[: a.shape[0], : a.shape[1]].set(a.astype(dtype))


# ---------------------------------------------------------------------------
# Stage 1: per-row-tile node transform.
#   h = LeakyReLU(x @ W1 + b1) ; m = h @ Wg      (both emitted in bf16)
# ---------------------------------------------------------------------------
def stage1_kernel(x_ref, w1_ref, b1_ref, wg_ref, h_ref, m_ref):
    h = _leaky(
        jnp.dot(x_ref[...], w1_ref[...], preferred_element_type=jnp.float32)
        + b1_ref[...]
    )
    hb = h.astype(h_ref.dtype)
    h_ref[...] = hb
    m_ref[...] = jnp.dot(
        hb, wg_ref[...], preferred_element_type=jnp.float32
    ).astype(m_ref.dtype)


# ---------------------------------------------------------------------------
# Stage 2: tile-skipped sparse aggregation + fused heads.
#   For dst tile i, only the compacted nonzero src tiles (scalar-prefetched) are
#   streamed:  acc += int8->bf16(A[i, src_ids[i,k]]) @ m[src_ids[i,k]]
#   At the last slot:
#     agg      = acc + bg
#     node_emb = leaky(h) @ Wf1 + leaky(agg) @ Wf2 + bf
#     uv       = leaky(node_emb) @ Wl_packed       (lane-dense [TM, DOUT_P] out)
# ---------------------------------------------------------------------------
def make_stage2_kernel(tk, m_resident):
    def kernel(src_ids_ref, counts_ref, adj_ref, m_ref, h_ref, bg_ref,
               wf1_ref, wf2_ref, bf_ref, wl_ref, uv_ref, acc_ref):
        i = pl.program_id(0)
        k = pl.program_id(1)

        @pl.when(k == 0)
        def _():
            acc_ref[...] = jnp.zeros_like(acc_ref)

        @pl.when(k < counts_ref[i])
        def _():
            # int8 edge counts -> bf16 right after load (VPU cast, hidden under MXU).
            a = adj_ref[...].astype(jnp.float32).astype(jnp.bfloat16)
            if m_resident:
                row0 = pl.multiple_of(src_ids_ref[i, k] * tk, tk)
                mk = m_ref[pl.ds(row0, tk), :]
            else:
                mk = m_ref[...]
            acc_ref[...] += jnp.dot(a, mk, preferred_element_type=jnp.float32)

        @pl.when(k == pl.num_programs(1) - 1)
        def _():
            agg = acc_ref[...] + bg_ref[...]
            gh = _leaky(h_ref[...])                      # leaky directly in bf16
            ga = _leaky(agg).astype(jnp.bfloat16)
            node_emb = (
                jnp.dot(gh, wf1_ref[...], preferred_element_type=jnp.float32)
                + jnp.dot(ga, wf2_ref[...], preferred_element_type=jnp.float32)
                + bf_ref[...]
            )
            p = _leaky(node_emb).astype(jnp.bfloat16)
            uv_ref[...] = jnp.dot(p, wl_ref[...],
                                  preferred_element_type=jnp.float32)

    return kernel


def gat_link_forward(params, X, edge_indices, edge_indices_pred):
    """X: [N, dim_in] float features; edge_indices: [2, E]; edge_indices_pred: [2, E_pred]."""
    f32, bf16 = jnp.float32, jnp.bfloat16
    N, Din = X.shape
    H = params["w1"].shape[1]
    dim_out = params["wl1"].shape[1]

    # --- TPU-friendly padded shapes / tiles ---
    Din_p = _round_up(Din, 128)
    H_p = _round_up(H, 128)
    DOUT_P = max(128, _round_up(2 * dim_out, 128))   # lane-dense packed link head

    n128 = _round_up(N, 128)
    # dst-row tile TM: pow2*128, <=512, and >=2 row tiles when possible (v7x megacore)
    half = max(128, n128 // 2)
    TM = 512 if half >= 512 else (256 if half >= 256 else 128)
    TM = min(TM, n128)
    # src/reduction tile TK: pow2*128, up to 1024 (amortizes per-grid-step overhead)
    TK = 128
    while TK * 2 <= min(1024, n128):
        TK *= 2
    N_pad = _round_up(N, max(TM, TK))    # TM, TK are pow2*128 -> max divides N_pad
    n_dst_t = N_pad // TM
    n_src_t = N_pad // TK

    # --- pad inputs / parameters (zero padding is exact: contributes nothing) ---
    x_p = jnp.zeros((N_pad, Din_p), bf16).at[:N, :Din].set(X.astype(bf16))
    w1 = _pad2(params["w1"], Din_p, H_p).astype(bf16)
    b1 = _pad2(params["b1"], 1, H_p)
    wg = _pad2(params["wg"], H_p, H_p).astype(bf16)
    bg = _pad2(params["bg"], 1, H_p)
    wf1 = _pad2(params["wf1"], H_p, H_p).astype(bf16)
    wf2 = _pad2(params["wf2"], H_p, H_p).astype(bf16)
    bf_ = _pad2(params["bf"], 1, H_p)
    # packed link-head weight: cols [0:dout] = Wl_top (node i), [dout:2*dout] = Wl_bot (node j)
    wl = jnp.zeros((H_p, DOUT_P), f32)
    wl = wl.at[:H, :dim_out].set(params["wl1"])
    wl = wl.at[:H, dim_out:2 * dim_out].set(params["wl2"])
    wl = wl.astype(bf16)

    # --- adjacency: int8 edge counts in HBM + tile-compaction metadata (host glue) ---
    # TODO(synk): this needs concrete (non-traced) edge_indices; under jit, pad
    # max_slots to n_src_t and build the tile pattern with jnp instead of numpy.
    src_np = np.asarray(edge_indices[0])
    dst_np = np.asarray(edge_indices[1])
    adj_counts = np.zeros((N_pad, N_pad), np.int32)
    np.add.at(adj_counts, (dst_np, src_np), 1)
    # TODO(synk): int8 saturates duplicate-edge multiplicities above 127.
    adj_i8 = jnp.asarray(np.clip(adj_counts, 0, 127).astype(np.int8))

    tile_nnz = adj_counts.reshape(n_dst_t, TM, n_src_t, TK).sum(axis=(1, 3)) > 0
    counts_np = tile_nnz.sum(axis=1).astype(np.int32)          # nnz src tiles per dst tile
    max_slots = max(1, int(counts_np.max()))
    src_ids_np = np.zeros((n_dst_t, max_slots), np.int32)
    for t in range(n_dst_t):
        nz = np.nonzero(tile_nnz[t])[0]
        if nz.size:
            src_ids_np[t, :nz.size] = nz
            src_ids_np[t, nz.size:] = nz[-1]   # clamp padding slots: repeated block idx -> DMA deduped
    src_ids = jnp.asarray(src_ids_np)
    counts = jnp.asarray(counts_np)
    nnz_tiles = int(tile_nnz.sum())

    # --- Pallas stage 1: per-row-tile h, m ---
    grid1 = (N_pad // TM,)
    h_bf, m_bf = pl.pallas_call(
        stage1_kernel,
        out_shape=(
            jax.ShapeDtypeStruct((N_pad, H_p), bf16),
            jax.ShapeDtypeStruct((N_pad, H_p), bf16),
        ),
        grid_spec=pltpu.PrefetchScalarGridSpec(
            num_scalar_prefetch=0,
            grid=grid1,
            in_specs=[
                pl.BlockSpec((TM, Din_p), lambda i: (i, 0)),    # x rows
                pl.BlockSpec((Din_p, H_p), lambda i: (0, 0)),   # W1 (resident)
                pl.BlockSpec((1, H_p), lambda i: (0, 0)),       # b1
                pl.BlockSpec((H_p, H_p), lambda i: (0, 0)),     # Wg (resident)
            ],
            out_specs=(
                pl.BlockSpec((TM, H_p), lambda i: (i, 0)),      # h
                pl.BlockSpec((TM, H_p), lambda i: (i, 0)),      # m
            ),
        ),
        compiler_params=pltpu.CompilerParams(
            dimension_semantics=("parallel",)),
    )(x_p, w1, b1, wg)

    # --- Pallas stage 2: tile-skipped A@m reduction + fused heads ---
    # m VMEM-resident when it fits the budget (v7x has only 64 MiB/TC); else stream per slot.
    m_resident = (N_pad * H_p * 2) <= 8 * 1024 * 1024
    if m_resident:
        m_spec = pl.BlockSpec((N_pad, H_p), lambda i, k, s, c: (0, 0))
    else:
        m_spec = pl.BlockSpec((TK, H_p), lambda i, k, s, c: (s[i, k], 0))

    flops = (2 * nnz_tiles * TM * TK * H_p
             + 2 * N_pad * H_p * (2 * H_p + DOUT_P))
    bytes_accessed = (nnz_tiles * TM * TK                 # int8 adjacency tiles
                      + 2 * N_pad * H_p * 2               # h + m (bf16)
                      + N_pad * DOUT_P * 4                # uv output (f32)
                      + (2 * H_p * H_p + H_p * DOUT_P) * 2)  # resident weights

    grid2 = (n_dst_t, max_slots)
    uv = pl.pallas_call(
        make_stage2_kernel(TK, m_resident),
        out_shape=jax.ShapeDtypeStruct((N_pad, DOUT_P), f32),
        grid_spec=pltpu.PrefetchScalarGridSpec(
            num_scalar_prefetch=2,
            grid=grid2,
            in_specs=[
                pl.BlockSpec((TM, TK), lambda i, k, s, c: (i, s[i, k])),  # adj tile (sparse-skipped)
                m_spec,                                                    # m
                pl.BlockSpec((TM, H_p), lambda i, k, s, c: (i, 0)),        # h (dst rows)
                pl.BlockSpec((1, H_p), lambda i, k, s, c: (0, 0)),         # bg
                pl.BlockSpec((H_p, H_p), lambda i, k, s, c: (0, 0)),       # Wf1 (resident)
                pl.BlockSpec((H_p, H_p), lambda i, k, s, c: (0, 0)),       # Wf2 (resident)
                pl.BlockSpec((1, H_p), lambda i, k, s, c: (0, 0)),         # bf
                pl.BlockSpec((H_p, DOUT_P), lambda i, k, s, c: (0, 0)),    # Wl packed (resident)
            ],
            out_specs=pl.BlockSpec((TM, DOUT_P), lambda i, k, s, c: (i, 0)),
            scratch_shapes=[pltpu.VMEM((TM, H_p), jnp.float32)],
        ),
        compiler_params=pltpu.CompilerParams(
            dimension_semantics=("parallel", "arbitrary"),
            vmem_limit_bytes=64 * 1024 * 1024),
        cost_estimate=pl.CostEstimate(
            flops=flops, transcendentals=0, bytes_accessed=bytes_accessed),
    )(src_ids, counts, adj_i8, m_bf, h_bf, bg, wf1, wf2, bf_, wl)

    # --- glue: per-edge score = u[i] + v[j] + bl (scalar gather, not [E, H]) ---
    ei, ej = edge_indices_pred[0], edge_indices_pred[1]
    u = uv[:N, :dim_out]
    v = uv[:N, dim_out:2 * dim_out]
    score = jnp.take(u, ei, axis=0) + jnp.take(v, ej, axis=0) + params["bl"]
    score = jnp.squeeze(score)   # torch .squeeze() (dim_out = 1 -> [E_pred])
    # GCNConvBase returns (None, None) attention -> gatnode returns (None, [None])
    return score, (None, [None])


def init_params(key, dim_in, dim_hidden, dim_out):
    ks = jax.random.split(key, 10)
    s = 0.1
    H = dim_hidden
    return {
        # linearSeq: Linear(dim_in, H)
        "w1": s * jax.random.normal(ks[0], (dim_in, H), jnp.float32),
        "b1": s * jax.random.normal(ks[1], (1, H), jnp.float32),
        # GCNConv: lin (no bias) + separate bias
        "wg": s * jax.random.normal(ks[2], (H, H), jnp.float32),
        "bg": s * jax.random.normal(ks[3], (1, H), jnp.float32),
        # gatnode.linear_final: Linear(2H, H) split into two H x H halves
        "wf1": s * jax.random.normal(ks[4], (H, H), jnp.float32),
        "wf2": s * jax.random.normal(ks[5], (H, H), jnp.float32),
        "bf": s * jax.random.normal(ks[6], (1, H), jnp.float32),
        # gatlink.linear: Linear(2H, dim_out) split into two H x dim_out halves
        "wl1": s * jax.random.normal(ks[7], (H, dim_out), jnp.float32),
        "wl2": s * jax.random.normal(ks[8], (H, dim_out), jnp.float32),
        "bl": s * jax.random.normal(ks[9], (1, dim_out), jnp.float32),
    }


def _reference_f32(params, X, edge_indices, edge_indices_pred):
    # Pure f32 reference (exact PyTorch semantics).
    h = _leaky(X @ params["w1"] + params["b1"])
    src, dst = edge_indices[0], edge_indices[1]
    m = h @ params["wg"]
    agg = jnp.zeros_like(h).at[dst].add(m[src]) + params["bg"]
    g = _leaky(jnp.concatenate([h, agg], axis=1))
    wf = jnp.concatenate([params["wf1"], params["wf2"]], axis=0)
    node_emb = g @ wf + params["bf"]
    i, j = edge_indices_pred[0], edge_indices_pred[1]
    p = _leaky(jnp.concatenate([node_emb[i], node_emb[j]], axis=1))
    wl = jnp.concatenate([params["wl1"], params["wl2"]], axis=0)
    return jnp.squeeze(p @ wl + params["bl"])


def _reference_matched(params, X, edge_indices, edge_indices_pred):
    # Reference emulating the kernel's precision: bf16 matmul operands, f32 accumulation,
    # bf16 storage of h/m between stages, leaky on bf16 h in the epilogue.
    f32, bf16 = jnp.float32, jnp.bfloat16
    dot = lambda a, b: jnp.dot(a.astype(bf16), b.astype(bf16),
                               preferred_element_type=f32)
    N = X.shape[0]
    h = _leaky(dot(X, params["w1"]) + params["b1"]).astype(bf16)
    m = dot(h, params["wg"]).astype(bf16)
    src, dst = edge_indices[0], edge_indices[1]
    adj = jnp.zeros((N, N), f32).at[dst, src].add(1.0)
    agg = dot(adj, m) + params["bg"]
    gh = _leaky(h)                                # bf16, as in the kernel epilogue
    ga = _leaky(agg).astype(bf16)
    node_emb = dot(gh, params["wf1"]) + dot(ga, params["wf2"]) + params["bf"]
    p = _leaky(node_emb).astype(bf16)
    u = dot(p, params["wl1"])
    v = dot(p, params["wl2"])
    i, j = edge_indices_pred[0], edge_indices_pred[1]
    return jnp.squeeze(u[i] + v[j] + params["bl"])


if __name__ == "__main__":
    key = jax.random.PRNGKey(0)
    k_param, k_x, k_e, k_ep = jax.random.split(key, 4)

    N = 48            # nodes
    E = 96            # message-passing edges
    E_pred = 24       # link-prediction edges
    dim_in = 32
    dim_hidden = 32
    dim_out = 1

    params = init_params(k_param, dim_in, dim_hidden, dim_out)

    X = jax.random.normal(k_x, (N, dim_in), jnp.float32)
    edge_indices = jax.random.randint(k_e, (2, E), 0, N, jnp.int32)
    edge_indices_pred = jax.random.randint(k_ep, (2, E_pred), 0, N, jnp.int32)

    score, (edge_inds, attn_list) = gat_link_forward(
        params, X, edge_indices, edge_indices_pred)
    score = jax.block_until_ready(score)
    assert score.shape == (E_pred,)

    # Tight check against a precision-matched (bf16 operands, f32 accum) reference.
    ref_m = _reference_matched(params, X, edge_indices, edge_indices_pred)
    assert jnp.allclose(score, ref_m, atol=2e-3, rtol=2e-3), (score, ref_m)

    # Loose sanity check against the exact f32 reference (bf16 rounding only).
    ref_f32 = _reference_f32(params, X, edge_indices, edge_indices_pred)
    assert jnp.allclose(score, ref_f32, atol=5e-2, rtol=5e-2), (score, ref_f32)

    # TODO(synk): GATConv / GATv2Conv / TransformerConv attention variants are not
    # implemented; this realizes the 'gcnconv' model_type branch (attention = None).
    print("KERNEL_OK")
</pallas_src>

<mosaic_0001>
module attributes {stable_mosaic.version = 11 : i64} {
  func.func @stage1_kernel(%arg0: i32, %arg1: memref<128x128xbf16, #tpu.memory_space<vmem>>, %arg2: memref<128x128xbf16, #tpu.memory_space<vmem>>, %arg3: memref<1x128xf32, #tpu.memory_space<vmem>>, %arg4: memref<128x128xbf16, #tpu.memory_space<vmem>>, %arg5: memref<128x128xbf16, #tpu.memory_space<vmem>>, %arg6: memref<128x128xbf16, #tpu.memory_space<vmem>>) attributes {dimension_semantics = [#tpu.dimension_semantics<parallel>], iteration_bounds = array<i64: 1>, scalar_prefetch = 0 : i64, scratch_operands = 0 : i64, tpu.core_type = #tpu.core_type<tc>, window_params = [{transform_indices = @transform_0, window_bounds = array<i64: 128, 128>}, {pipeline_mode = #tpu.pipeline_mode<synchronous>, transform_indices = @transform_1, window_bounds = array<i64: 128, 128>}, {pipeline_mode = #tpu.pipeline_mode<synchronous>, transform_indices = @transform_2, window_bounds = array<i64: 1, 128>}, {pipeline_mode = #tpu.pipeline_mode<synchronous>, transform_indices = @transform_3, window_bounds = array<i64: 128, 128>}, {transform_indices = @transform_4, window_bounds = array<i64: 128, 128>}, {transform_indices = @transform_5, window_bounds = array<i64: 128, 128>}]} {
    %c0 = arith.constant 0 : index
    %c0_0 = arith.constant 0 : index
    %0 = vector.load %arg1[%c0, %c0_0] : memref<128x128xbf16, #tpu.memory_space<vmem>>, vector<128x128xbf16>
    %c0_1 = arith.constant 0 : index
    %c0_2 = arith.constant 0 : index
    %1 = vector.load %arg2[%c0_1, %c0_2] : memref<128x128xbf16, #tpu.memory_space<vmem>>, vector<128x128xbf16>
    %cst = arith.constant dense<0.000000e+00> : vector<128x128xf32>
    %2 = tpu.matmul %0, %1, %cst {dimension_numbers = #tpu.dot_dimension_numbers<[1], [0], [0], [1], [0, 0, 1, 1], [], []>} : vector<128x128xbf16>, vector<128x128xbf16>, vector<128x128xf32> -> vector<128x128xf32>
    %c0_3 = arith.constant 0 : index
    %c0_4 = arith.constant 0 : index
    %3 = vector.load %arg3[%c0_3, %c0_4] : memref<1x128xf32, #tpu.memory_space<vmem>>, vector<1x128xf32>
    %4 = vector.broadcast %3 : vector<1x128xf32> to vector<128x128xf32>
    %5 = arith.addf %2, %4 : vector<128x128xf32>
    %cst_5 = arith.constant 0.000000e+00 : f32
    %6 = vector.broadcast %cst_5 : f32 to vector<128x128xf32>
    %7 = arith.cmpf ogt, %5, %6 : vector<128x128xf32>
    %cst_6 = arith.constant 0.00999999977 : f32
    %8 = vector.broadcast %cst_6 : f32 to vector<128x128xf32>
    %9 = arith.mulf %8, %5 : vector<128x128xf32>
    %10 = arith.select %7, %5, %9 : vector<128x128xi1>, vector<128x128xf32>
    %11 = arith.truncf %10 : vector<128x128xf32> to vector<128x128xbf16>
    %c0_7 = arith.constant 0 : index
    %c0_8 = arith.constant 0 : index
    %12 = vector.load %arg5[%c0_7, %c0_8] : memref<128x128xbf16, #tpu.memory_space<vmem>>, vector<128x128xbf16>
    tpu.vector_store %arg5[%c0_7, %c0_8], %11 {strides = array<i32>} : memref<128x128xbf16, #tpu.memory_space<vmem>>, vector<128x128xbf16>,
    %c0_9 = arith.constant 0 : index
    %c0_10 = arith.constant 0 : index
    %13 = vector.load %arg4[%c0_9, %c0_10] : memref<128x128xbf16, #tpu.memory_space<vmem>>, vector<128x128xbf16>
    %cst_11 = arith.constant dense<0.000000e+00> : vector<128x128xf32>
    %14 = tpu.matmul %11, %13, %cst_11 {dimension_numbers = #tpu.dot_dimension_numbers<[1], [0], [0], [1], [0, 0, 1, 1], [], []>} : vector<128x128xbf16>, vector<128x128xbf16>, vector<128x128xf32> -> vector<128x128xf32>
    %15 = arith.truncf %14 : vector<128x128xf32> to vector<128x128xbf16>
    %c0_12 = arith.constant 0 : index
    %c0_13 = arith.constant 0 : index
    %16 = vector.load %arg6[%c0_12, %c0_13] : memref<128x128xbf16, #tpu.memory_space<vmem>>, vector<128x128xbf16>
    tpu.vector_store %arg6[%c0_12, %c0_13], %15 {strides = array<i32>} : memref<128x128xbf16, #tpu.memory_space<vmem>>, vector<128x128xbf16>,
    return
  }
  func.func @transform_0(%arg0: i32) -> (i32, i32) {
    %c0_i32 = arith.constant 0 : i32
    %c0_i32_0 = arith.constant 0 : i32
    return %arg0, %c0_i32 : i32, i32
  }
  func.func @transform_1(%arg0: i32) -> (i32, i32) {
    %c0_i32 = arith.constant 0 : i32
    %c0_i32_0 = arith.constant 0 : i32
    %c0_i32_1 = arith.constant 0 : i32
    return %c0_i32, %c0_i32_0 : i32, i32
  }
  func.func @transform_2(%arg0: i32) -> (i32, i32) {
    %c0_i32 = arith.constant 0 : i32
    %c0_i32_0 = arith.constant 0 : i32
    %c0_i32_1 = arith.constant 0 : i32
    return %c0_i32, %c0_i32_0 : i32, i32
  }
  func.func @transform_3(%arg0: i32) -> (i32, i32) {
    %c0_i32 = arith.constant 0 : i32
    %c0_i32_0 = arith.constant 0 : i32
    %c0_i32_1 = arith.constant 0 : i32
    return %c0_i32, %c0_i32_0 : i32, i32
  }
  func.func @transform_4(%arg0: i32) -> (i32, i32) {
    %c0_i32 = arith.constant 0 : i32
    %c0_i32_0 = arith.constant 0 : i32
    return %arg0, %c0_i32 : i32, i32
  }
  func.func @transform_5(%arg0: i32) -> (i32, i32) {
    %c0_i32 = arith.constant 0 : i32
    %c0_i32_0 = arith.constant 0 : i32
    return %arg0, %c0_i32 : i32, i32
  }
}

</mosaic_0001>

<bundles_post_ra>
// kernel: tpu_custom_call.1
= control target key start
LH: loop header
LB: loop body
LE: loop exit
PB: predicated region body
PF: predicated region fallthrough
CT: control target
= control target key end

     0   :  { %11 = vsyncpa [#allocation3], 0  ;;  %s1204_s0 = inlined_call_operand.hbm [shape: bf16[128,128], index: 0, kind: input, shape index: {}]   ;;  %s1205_s1 = inlined_call_operand.hbm [shape: bf16[128,128], index: 1, kind: input, shape index: {}]   ;;  %s1206_s2 = inlined_call_operand.vmem [shape: f32[1,128], index: 2, kind: input, shape index: {}]   ;;  %s1207_s3 = inlined_call_operand.hbm [shape: bf16[128,128], index: 3, kind: input, shape index: {}]   ;;  %s1208_s4 = inlined_call_operand.hbm [shape: bf16[128,128], index: 4, kind: output, shape index: {0}]   ;;  %s1209_s5 = inlined_call_operand.hbm [shape: bf16[128,128], index: 5, kind: output, shape index: {1}]  }
   0x1   :  { %12 = vsyncpa [#allocation6], 0 }
   0x2   :  { %13 = vsyncpa [#allocation4], 0 }
   0x3   :  { %14 = vsyncpa [#allocation10], 0  ;;  %s1116_s18 = smov [#allocation5]   ;;  %s1117_s20 = smov [#allocation2]  }
   0x4   :  { %s32_s19 = sshll.u32 %s1116_s18, 4  ;;  %s20_s21 = sshll.u32 %s1117_s20, 4  ;;  %s33_s19 = int_to_ptr.vmem [resolvable:$true] %s32_s19  ;;  %s21_s21 = int_to_ptr.vmem [resolvable:$true] %s20_s21 }
   0x5   :  { %s1016_s22 = scalar_lea.vmem %s33_s19, 1024  ;;  %p1021_p1 = scmp.lt.s32.totalorder %s33_s19, %s33_s19 }
   0x6   :  { %p1017_p0 = scmp.ne.s32.totalorder %s33_s19, %s1016_s22  ;;  %p1022_p2 = scmp.lt.s32.totalorder %s1016_s22, %s1016_s22 }
   0x8   :  { %p1023_p3 = por %p1022_p2, %p1021_p1 }
   0xa   :  { %p1024_p4 = pnand %p1023_p3, %p1017_p0 }
   0xc   :  { %1027 = shalt.err (!%p1024_p4)
}
   0xd   :  { %s1118_s23 = smov 64   ;;  %s1119_s24 = smov 4  }
   0xe   :  { %38 = dma.hbm_to_vmem [thread:$0]  %s1205_s1, 1024, %s33_s19, [#allocation6], %s1118_s23, %s1118_s23, %s1119_s24  }
   0xf   :  { %s1036_s27 = scalar_lea.vmem %s21_s21, 1024  ;;  %p1041_p6 = scmp.lt.s32.totalorder %s21_s21, %s21_s21 }
  0x10   :  { %p1037_p5 = scmp.ne.s32.totalorder %s21_s21, %s1036_s27  ;;  %p1042_p7 = scmp.lt.s32.totalorder %s1036_s27, %s1036_s27 }
  0x12   :  { %p1043_p8 = por %p1042_p7, %p1041_p6 }
  0x14   :  { %p1044_p9 = pnand %p1043_p8, %p1037_p5 }
  0x16   :  { %1047 = shalt.err (!%p1044_p9)
}
  0x17   :  { %26 = dma.hbm_to_vmem [thread:$0]  %s1204_s0, 1024, %s21_s21, [#allocation3], %s1118_s23, %s1118_s23, %s1119_s24  }
  0x18   :  { %s1120_s30 = smov [#allocation7]  }
  0x19   :  { %s46_s6 = sshll.u32 %s1120_s30, 4  ;;  %s47_s6 = int_to_ptr.vmem [resolvable:$true] %s46_s6 }
  0x1a   :  { %s1056_s7 = scalar_lea.vmem %s47_s6, 1024  ;;  %p1061_p11 = scmp.lt.s32.totalorder %s47_s6, %s47_s6 }
  0x1b   :  { %p1057_p10 = scmp.ne.s32.totalorder %s47_s6, %s1056_s7  ;;  %p1062_p12 = scmp.lt.s32.totalorder %s1056_s7, %s1056_s7 }
  0x1d   :  { %p1063_p13 = por %p1062_p12, %p1061_p11 }
  0x1f   :  { %p1064_p0 = pnand %p1063_p13, %p1057_p10 }
  0x21   :  { %1067 = shalt.err (!%p1064_p0)
}
  0x22   :  { %52 = dma.hbm_to_vmem [thread:$0]  %s1207_s3, 1024, %s47_s6, [#allocation6], %s1118_s23, %s1118_s23, %s1119_s24  }
  0x23   :  { %1108 = dma.done.wait [#allocation3], 1024  }
  0x24   :  { %1109 = vsyncadd [#allocation3], 4294966272 }
  0x25   :  { %1110 = dma.done.wait [#allocation6], 2048  }
  0x26   :  { %1111 = vsyncadd [#allocation6], 4294965248  ;;  %v984_v0 = vld [vmem:[#allocation5 + $0x38] sm:$0xff]   ;;  %v985_v1 = vld [vmem:[#allocation5 + $0x30] sm:$0xff]  }
  0x27   :  { %913 = vmatprep.subr.bf16.mxu0 %v984_v0  ;;  %v986_v2 = vld [vmem:[#allocation5 + $0x28] sm:$0xff]   ;;  %v987_v3 = vld [vmem:[#allocation5 + $0x20] sm:$0xff]   ;;  %v988_v5 = vld [vmem:[#allocation5 + $0x18] sm:$0xff]  }
  0x28   :  { %914 = vmatpush3.bf16.msra.mxu0 %v984_v0  ;;  %v992_v4 = vld [vmem:[#allocation2] sm:$0xff]   ;;  %v989_v6 = vld [vmem:[#allocation5 + $0x10] sm:$0xff]   ;;  %v1000_v7 = vld [vmem:[#allocation7 + $0x38] sm:$0xff]  }
  0x29   :  { %915 = vmatprep.subr.bf16.mxu0 %v985_v1  ;;  %929 = vmatprep.mubr.bf16.mxu0 %v992_v4  ;;  %v1001_v8 = vld [vmem:[#allocation7 + $0x30] sm:$0xff]   ;;  %v990_v9 = vld [vmem:[#allocation5 + $0x8] sm:$0xff]   ;;  %v991_v11 = vld [vmem:[#allocation5] sm:$0xff]  }
  0x2a   :  { %945 = vmatprep.subr.bf16.mxu1 %v1000_v7  ;;  %v1002_v10 = vld [vmem:[#allocation7 + $0x28] sm:$0xff]   ;;  %v1003_v12 = vld [vmem:[#allocation7 + $0x20] sm:$0xff]   ;;  %v1004_v13 = vld [vmem:[#allocation7 + $0x18] sm:$0xff]  }
  0x2b   :  { %946 = vmatpush3.bf16.msra.mxu1 %v1000_v7  ;;  %v993_v14 = vld [vmem:[#allocation2 + $0x8] sm:$0xff]   ;;  %v994_v15 = vld [vmem:[#allocation2 + $0x10] sm:$0xff]   ;;  %v995_v16 = vld [vmem:[#allocation2 + $0x18] sm:$0xff]  }
  0x2c   :  { %916 = vmatpush3.bf16.msra.mxu0 %v985_v1  ;;  %947 = vmatprep.subr.bf16.mxu1 %v1001_v8  ;;  %v996_v17 = vld [vmem:[#allocation2 + $0x20] sm:$0xff]   ;;  %v997_v18 = vld [vmem:[#allocation2 + $0x28] sm:$0xff]   ;;  %v998_v19 = vld [vmem:[#allocation2 + $0x30] sm:$0xff]  }
  0x2d   :  { %917 = vmatprep.subr.bf16.mxu0 %v986_v2  ;;  %v999_v20 = vld [vmem:[#allocation2 + $0x38] sm:$0xff]   ;;  %v1005_v21 = vld [vmem:[#allocation7 + $0x10] sm:$0xff]   ;;  %v1006_v22 = vld [vmem:[#allocation7 + $0x8] sm:$0xff]  }
  0x2e   :  { %v1007_v23 = vld [vmem:[#allocation7] sm:$0xff]  }
  0x2f   :  { %948 = vmatpush3.bf16.msra.mxu1 %v1001_v8  ;;  %v1174_v24 = vld [vmem:[%s1206_s2] ss:$0 sm:$0xff]  ;;  %s1121_s2 = smov [#allocation8]  }
  0x30   :  { %918 = vmatpush3.bf16.msra.mxu0 %v986_v2  ;;  %949 = vmatprep.subr.bf16.mxu1 %v1002_v10  ;;  %s669_s9 = sshll.u32 %s1121_s2, 4  ;;  %s670_s9 = int_to_ptr.vmem [resolvable:$true] %s669_s9 }
  0x31   :  { %919 = vmatprep.subr.bf16.mxu0 %v987_v3  ;;  %s1068_s10 = scalar_lea.vmem %s670_s9, 1024  ;;  %p1073_p2 = scmp.lt.s32.totalorder %s670_s9, %s670_s9 }
  0x32   :  { %p1069_p1 = scmp.ne.s32.totalorder %s670_s9, %s1068_s10  ;;  %p1074_p3 = scmp.lt.s32.totalorder %s1068_s10, %s1068_s10 }
  0x33   :  { %950 = vmatpush3.bf16.msra.mxu1 %v1002_v10 }
  0x34   :  { %920 = vmatpush3.bf16.msra.mxu0 %v987_v3  ;;  %951 = vmatprep.subr.bf16.mxu1 %v1003_v12  ;;  %p1075_p4 = por %p1074_p3, %p1073_p2 }
  0x35   :  { %921 = vmatprep.subr.bf16.mxu0 %v988_v5 }
  0x36   :  { %p1076_p5 = pnand %p1075_p4, %p1069_p1 }
  0x37   :  { %952 = vmatpush3.bf16.msra.mxu1 %v1003_v12 }
  0x38   :  { %922 = vmatpush3.bf16.msra.mxu0 %v988_v5  ;;  %953 = vmatprep.subr.bf16.mxu1 %v1004_v13 }
  0x39   :  { %923 = vmatprep.subr.bf16.mxu0 %v989_v6 }
  0x3b   :  { %954 = vmatpush3.bf16.msra.mxu1 %v1004_v13 }
  0x3c   :  { %924 = vmatpush3.bf16.msra.mxu0 %v989_v6  ;;  %955 = vmatprep.subr.bf16.mxu1 %v1005_v21 }
  0x3d   :  { %925 = vmatprep.subr.bf16.mxu0 %v990_v9 }
  0x3f   :  { %956 = vmatpush3.bf16.msra.mxu1 %v1005_v21 }
  0x40   :  { %926 = vmatpush3.bf16.msra.mxu0 %v990_v9  ;;  %957 = vmatprep.subr.bf16.mxu1 %v1006_v22 }
  0x41   :  { %927 = vmatprep.subr.bf16.mxu0 %v991_v11 }
  0x43   :  { %958 = vmatpush3.bf16.msra.mxu1 %v1006_v22 }
  0x44   :  { %928 = vmatpush3.bf16.msra.mxu0 %v991_v11  ;;  %959 = vmatprep.subr.bf16.mxu1 %v1007_v23 }
  0x47   :  { %930 = vmatmul.mubr.bf16.vlgmr.msra.gmra.mxu0 %v993_v14  ;;  %960 = vmatpush3.bf16.msra.mxu1 %v1007_v23 }
  0x48   :  { %933 = vmatprep.mubr.bf16.mxu0 %v994_v15 }
  0x4f   :  { %934 = vmatmul.mubr.bf16.gmra.mxu0 %v995_v16 }
  0x50   :  { %937 = vmatprep.mubr.bf16.mxu0 %v996_v17 }
  0x57   :  { %938 = vmatmul.mubr.bf16.gmra.mxu0 %v997_v18 }
  0x58   :  { %941 = vmatprep.mubr.bf16.mxu0 %v998_v19 }
  0x5f   :  { %942 = vmatmul.mubr.bf16.gmra.mxu0 %v999_v20 }
 0x107   :  { %v931_v25 = vpop.f32.mrf.mxu0 }
 0x108   :  { %v241_v26 = vadd.f32 %v931_v25, %v1174_v24 }
 0x109   :  { %v232_v27 = vpop.f32.mrf.mxu0 }
 0x10a   :  { %v233_v28 = vadd.f32 %v1174_v24, %v232_v27  ;;  %v313_v29 = vmul.f32 0.01, %v241_v26  ;;  %vm297_vm0 = vcmp.gt.f32.partialorder %v241_v26, 0.0 }
 0x10b   :  { %v932_v30 = vpop.f32.mrf.mxu0 }
 0x10c   :  { %v244_v31 = vadd.f32 %v932_v30, %v1174_v24  ;;  %v311_v33 = vmul.f32 0.01, %v233_v28  ;;  %vm295_vm2 = vcmp.gt.f32.partialorder %v233_v28, 0.0  ;;  %v329_v37 = vsel %vm297_vm0, %v241_v26, %v313_v29 }
 0x10d   :  { %v235_v32 = vpop.f32.mrf.mxu0 }
 0x10e   :  { %vm298_vm1 = vcmp.gt.f32.partialorder %v244_v31, 0.0  ;;  %v314_v34 = vmul.f32 0.01, %v244_v31  ;;  %v236_v35 = vadd.f32 %v1174_v24, %v235_v32  ;;  %v327_v44 = vsel %vm295_vm2, %v233_v28, %v311_v33 }
 0x10f   :  { %v935_v36 = vpop.f32.mrf.mxu0 }
 0x110   :  { %v312_v38 = vmul.f32 0.01, %v236_v35  ;;  %v257_v39 = vadd.f32 %v935_v36, %v1174_v24  ;;  %vm296_vm3 = vcmp.gt.f32.partialorder %v236_v35, 0.0  ;;  %v330_v40 = vsel %vm298_vm1, %v244_v31, %v314_v34 }
 0x111   :  { %v248_v41 = vpop.f32.mrf.mxu0  ;;  %v344_v42 = vpack.c.bf16 %v330_v40, %v329_v37 }
 0x112   :  { %v249_v43 = vadd.f32 %v1174_v24, %v248_v41  ;;  %v328_v45 = vsel %vm296_vm3, %v236_v35, %v312_v38  ;;  %v317_v46 = vmul.f32 0.01, %v257_v39  ;;  %vm301_vm4 = vcmp.gt.f32.partialorder %v257_v39, 0.0 }
 0x113   :  { %v936_v47 = vpop.f32.mrf.mxu0  ;;  %v343_v48 = vpack.c.bf16 %v328_v45, %v327_v44  ;;  %867 = vst [vmem:[#allocation8 + $0x8] sm:$0xff] %v344_v42  }
 0x114   :  { %v260_v49 = vadd.f32 %v936_v47, %v1174_v24  ;;  %v315_v51 = vmul.f32 0.01, %v249_v43  ;;  %vm299_vm6 = vcmp.gt.f32.partialorder %v249_v43, 0.0  ;;  %v333_v55 = vsel %vm301_vm4, %v257_v39, %v317_v46 }
 0x115   :  { %v251_v50 = vpop.f32.mrf.mxu0  ;;  %791 = vst [vmem:[#allocation8] sm:$0xff] %v343_v48   ;;  %961 = vmatprep.mubr.bf16.mxu1 %v343_v48 }
 0x116   :  { %vm302_vm5 = vcmp.gt.f32.partialorder %v260_v49, 0.0  ;;  %v318_v52 = vmul.f32 0.01, %v260_v49  ;;  %v252_v53 = vadd.f32 %v1174_v24, %v251_v50  ;;  %962 = vmatmul.mubr.bf16.vlgmr.msra.gmra.mxu1 %v344_v42  ;;  %v331_v62 = vsel %vm299_vm6, %v249_v43, %v315_v51 }
 0x117   :  { %v939_v54 = vpop.f32.mrf.mxu0 }
 0x118   :  { %vm300_vm7 = vcmp.gt.f32.partialorder %v252_v53, 0.0  ;;  %v316_v56 = vmul.f32 0.01, %v252_v53  ;;  %v273_v57 = vadd.f32 %v939_v54, %v1174_v24  ;;  %v334_v58 = vsel %vm302_vm5, %v260_v49, %v318_v52 }
 0x119   :  { %v264_v59 = vpop.f32.mrf.mxu0  ;;  %v346_v60 = vpack.c.bf16 %v334_v58, %v333_v55 }
 0x11a   :  { %v265_v61 = vadd.f32 %v1174_v24, %v264_v59  ;;  %v332_v63 = vsel %vm300_vm7, %v252_v53, %v316_v56  ;;  %v321_v0 = vmul.f32 0.01, %v273_v57  ;;  %vm305_vm8 = vcmp.gt.f32.partialorder %v273_v57, 0.0 }
 0x11b   :  { %v940_v1 = vpop.f32.mrf.mxu0  ;;  %v345_v2 = vpack.c.bf16 %v332_v63, %v331_v62  ;;  %869 = vst [vmem:[#allocation8 + $0x18] sm:$0xff] %v346_v60  }
 0x11c   :  { %v276_v3 = vadd.f32 %v940_v1, %v1174_v24  ;;  %v319_v5 = vmul.f32 0.01, %v265_v61  ;;  %vm303_vm10 = vcmp.gt.f32.partialorder %v265_v61, 0.0  ;;  %v337_v9 = vsel %vm305_vm8, %v273_v57, %v321_v0 }
 0x11d   :  { %v267_v4 = vpop.f32.mrf.mxu0  ;;  %868 = vst [vmem:[#allocation8 + $0x10] sm:$0xff] %v345_v2   ;;  %965 = vmatprep.mubr.bf16.mxu1 %v345_v2 }
 0x11e   :  { %vm306_vm9 = vcmp.gt.f32.partialorder %v276_v3, 0.0  ;;  %v322_v6 = vmul.f32 0.01, %v276_v3  ;;  %v268_v7 = vadd.f32 %v1174_v24, %v267_v4  ;;  %966 = vmatmul.mubr.bf16.gmra.mxu1 %v346_v60  ;;  %v335_v16 = vsel %vm303_vm10, %v265_v61, %v319_v5 }
 0x11f   :  { %v943_v8 = vpop.f32.mrf.mxu0 }
 0x120   :  { %vm304_vm11 = vcmp.gt.f32.partialorder %v268_v7, 0.0  ;;  %v320_v10 = vmul.f32 0.01, %v268_v7  ;;  %v289_v11 = vadd.f32 %v943_v8, %v1174_v24  ;;  %v338_v12 = vsel %vm306_vm9, %v276_v3, %v322_v6 }
 0x121   :  { %v280_v13 = vpop.f32.mrf.mxu0  ;;  %v348_v14 = vpack.c.bf16 %v338_v12, %v337_v9 }
 0x122   :  { %v281_v15 = vadd.f32 %v1174_v24, %v280_v13  ;;  %v336_v17 = vsel %vm304_vm11, %v268_v7, %v320_v10  ;;  %v325_v20 = vmul.f32 0.01, %v289_v11  ;;  %vm309_vm12 = vcmp.gt.f32.partialorder %v289_v11, 0.0 }
 0x123   :  { %v944_v18 = vpop.f32.mrf.mxu0  ;;  %v347_v19 = vpack.c.bf16 %v336_v17, %v335_v16  ;;  %871 = vst [vmem:[#allocation8 + $0x28] sm:$0xff] %v348_v14  }
 0x124   :  { %v292_v21 = vadd.f32 %v944_v18, %v1174_v24  ;;  %v323_v23 = vmul.f32 0.01, %v281_v15  ;;  %vm307_vm14 = vcmp.gt.f32.partialorder %v281_v15, 0.0  ;;  %v341_v28 = vsel %vm309_vm12, %v289_v11, %v325_v20 }
 0x125   :  { %v283_v22 = vpop.f32.mrf.mxu0  ;;  %870 = vst [vmem:[#allocation8 + $0x20] sm:$0xff] %v347_v19   ;;  %969 = vmatprep.mubr.bf16.mxu1 %v347_v19 }
 0x126   :  { %vm310_vm13 = vcmp.gt.f32.partialorder %v292_v21, 0.0  ;;  %v326_v25 = vmul.f32 0.01, %v292_v21  ;;  %v284_v26 = vadd.f32 %v1174_v24, %v283_v22  ;;  %970 = vmatmul.mubr.bf16.gmra.mxu1 %v348_v14  ;;  %v339_v31 = vsel %vm307_vm14, %v281_v15, %v323_v23 }
 0x128   :  { %vm308_vm15 = vcmp.gt.f32.partialorder %v284_v26, 0.0  ;;  %v324_v27 = vmul.f32 0.01, %v284_v26  ;;  %v342_v29 = vsel %vm310_vm13, %v292_v21, %v326_v25 }
 0x129   :  { %v350_v30 = vpack.c.bf16 %v342_v29, %v341_v28 }
 0x12a   :  { %v340_v32 = vsel %vm308_vm15, %v284_v26, %v324_v27 }
 0x12b   :  { %v349_v33 = vpack.c.bf16 %v340_v32, %v339_v31  ;;  %873 = vst [vmem:[#allocation8 + $0x38] sm:$0xff] %v350_v30  }
 0x12d   :  { %872 = vst [vmem:[#allocation8 + $0x30] sm:$0xff] %v349_v33   ;;  %973 = vmatprep.mubr.bf16.mxu1 %v349_v33 }
 0x12e   :  { %974 = vmatmul.mubr.bf16.gmra.mxu1 %v350_v30 }
 0x12f   :  { %1079 = shalt.err (!%p1076_p5)
}
 0x130   :  { %675 = dma.vmem_to_hbm [thread:$0]  %s670_s9, 1024, %s1208_s4, [#allocation4], %s1118_s23, %s1118_s23, %s1119_s24  }
 0x131   :  { %s1122_s4 = smov [#allocation9]  }
 0x132   :  { %s681_s13 = sshll.u32 %s1122_s4, 4  ;;  %s682_s13 = int_to_ptr.vmem [resolvable:$true] %s681_s13 }
 0x133   :  { %s1088_s14 = scalar_lea.vmem %s682_s13, 1024  ;;  %p1093_p7 = scmp.lt.s32.totalorder %s682_s13, %s682_s13 }
 0x134   :  { %p1089_p6 = scmp.ne.s32.totalorder %s682_s13, %s1088_s14  ;;  %p1094_p8 = scmp.lt.s32.totalorder %s1088_s14, %s1088_s14 }
 0x136   :  { %p1095_p9 = por %p1094_p8, %p1093_p7 }
 0x138   :  { %p1096_p10 = pnand %p1095_p9, %p1089_p6 }
 0x1d6   :  { %v963_v24 = vpop.f32.mrf.mxu1 }
 0x1d8   :  { %v521_v34 = vpop.f32.mrf.mxu1 }
 0x1da   :  { %v964_v35 = vpop.f32.mrf.mxu1 }
 0x1db   :  { %v835_v36 = vpack.c.bf16 %v964_v35, %v963_v24 }
 0x1dc   :  { %v524_v37 = vpop.f32.mrf.mxu1 }
 0x1dd   :  { %874 = vst [vmem:[#allocation9 + $0x8] sm:$0xff] %v835_v36   ;;  %v830_v38 = vpack.c.bf16 %v524_v37, %v521_v34 }
 0x1de   :  { %v967_v39 = vpop.f32.mrf.mxu1 }
 0x1df   :  { %831 = vst [vmem:[#allocation9] sm:$0xff] %v830_v38  }
 0x1e0   :  { %v537_v40 = vpop.f32.mrf.mxu1 }
 0x1e2   :  { %v968_v41 = vpop.f32.mrf.mxu1 }
 0x1e3   :  { %v845_v42 = vpack.c.bf16 %v968_v41, %v967_v39 }
 0x1e4   :  { %v540_v43 = vpop.f32.mrf.mxu1 }
 0x1e5   :  { %876 = vst [vmem:[#allocation9 + $0x18] sm:$0xff] %v845_v42   ;;  %v840_v44 = vpack.c.bf16 %v540_v43, %v537_v40 }
 0x1e6   :  { %v971_v45 = vpop.f32.mrf.mxu1 }
 0x1e7   :  { %875 = vst [vmem:[#allocation9 + $0x10] sm:$0xff] %v840_v44  }
 0x1e8   :  { %v553_v46 = vpop.f32.mrf.mxu1 }
 0x1ea   :  { %v972_v47 = vpop.f32.mrf.mxu1 }
 0x1eb   :  { %v855_v48 = vpack.c.bf16 %v972_v47, %v971_v45 }
 0x1ec   :  { %v556_v49 = vpop.f32.mrf.mxu1 }
 0x1ed   :  { %878 = vst [vmem:[#allocation9 + $0x28] sm:$0xff] %v855_v48   ;;  %v850_v50 = vpack.c.bf16 %v556_v49, %v553_v46 }
 0x1ee   :  { %v975_v51 = vpop.f32.mrf.mxu1 }
 0x1ef   :  { %877 = vst [vmem:[#allocation9 + $0x20] sm:$0xff] %v850_v50  }
 0x1f0   :  { %v569_v52 = vpop.f32.mrf.mxu1 }
 0x1f2   :  { %v976_v53 = vpop.f32.mrf.mxu1 }
 0x1f3   :  { %v865_v54 = vpack.c.bf16 %v976_v53, %v975_v51 }
 0x1f4   :  { %v572_v55 = vpop.f32.mrf.mxu1 }
 0x1f5   :  { %880 = vst [vmem:[#allocation9 + $0x38] sm:$0xff] %v865_v54   ;;  %v860_v56 = vpack.c.bf16 %v572_v55, %v569_v52 }
 0x1f7   :  { %879 = vst [vmem:[#allocation9 + $0x30] sm:$0xff] %v860_v56  }
 0x1f8   :  { %1099 = shalt.err (!%p1096_p10)
}
 0x1f9   :  { %687 = dma.vmem_to_hbm [thread:$0]  %s682_s13, 1024, %s1209_s5, [#allocation10], %s1118_s23, %s1118_s23, %s1119_s24  }
 0x1fa   :  { %1112 = dma.done.wait [#allocation4], 1024  }
 0x1fb   :  { %1113 = vsyncadd [#allocation4], 4294966272 }
 0x1fc   :  { %1114 = dma.done.wait [#allocation10], 1024  }
 0x1fd   :  { %1115 = vsyncadd [#allocation10], 4294966272 }
 0x1fe   :  { %694 = vsyncpa [#allocation3], 1 }
 0x1ff   :  { %695 = vsyncpa [#allocation6], 1 }
 0x200   :  { %696 = vsyncpa [#allocation4], 1 }
 0x201   :  { %697 = vsyncpa [#allocation10], 1 }

</bundles_post_ra>
